<compile_context>
chip_gen: v6e
topology: v6e:2x2x1
jax: 0.10.0
libtpu: 0.0.40
codegen_flags: <defaults>
</compile_context>

<pallas_src>
import functools

import jax
import jax.numpy as jnp
from jax.experimental import pallas as pl
from jax.experimental.pallas import tpu as pltpu

_LANES = 128


# ---------------------------------------------------------------------------
# Fused kernel: streamed MSE reduction + CE-on-class-0 + AWL combine.
# ---------------------------------------------------------------------------
def _fused_awl_kernel(params_ref, pred_ref, tgt_ref, logits_ref, out_ref,
                      acc_ref, *, inv_n_mse, inv_b_ce):
    r = pl.program_id(0)

    @pl.when(r == 0)
    def _init():
        acc_ref[...] = jnp.zeros_like(acc_ref)

    # Per-tile squared-error accumulation: pure VPU adds into a vreg-shaped
    # scratch; the expensive cross-lane reduce is deferred to the last step.
    diff = pred_ref[...].astype(jnp.float32) - tgt_ref[...].astype(jnp.float32)
    acc_ref[...] += diff * diff

    @pl.when(r == pl.num_programs(0) - 1)
    def _finalize():
        # Task 1: MSE. Padding rows contribute exact zeros; true-count denom.
        loss1 = jnp.sum(acc_ref[...], keepdims=True) * inv_n_mse        # (1, 1)

        # Task 2: CE on class 0: mean_b [ logsumexp(logits_b) - logits_b[0] ].
        x = logits_ref[...].astype(jnp.float32)                         # (B, C)
        m = jnp.max(x, axis=-1, keepdims=True)
        lse = m + jnp.log(jnp.sum(jnp.exp(x - m), axis=-1, keepdims=True))
        loss2 = jnp.sum(lse - x[:, 0:1], keepdims=True) * inv_b_ce      # (1, 1)

        # AutomaticWeightedLoss.forward: sum_i 0.5/p_i^2 * loss_i + log(1+p_i^2)
        p = params_ref[...]                                             # (1, num)
        p2 = p * p
        task = jax.lax.broadcasted_iota(jnp.int32, p.shape, 1)
        losses = jnp.where(task == 0, loss1, loss2)                     # (1, num)
        # Exact reciprocal on purpose: tiny operand, approx buys nothing and
        # would break the 1e-5 tolerance.
        terms = 0.5 * pl.reciprocal(p2) * losses + jnp.log1p(p2)
        out_ref[...] = jnp.sum(terms, keepdims=True)


def fused_automatic_weighted_loss(params, pred, tgt, logits, *, tile_rows=512):
    """Fused: MSE(pred, tgt), CE-on-class-0(logits) and the AWL combine in a
    single gridded pallas_call.  params: (2,) f32 -> scalar f32."""
    num = int(params.shape[0])
    assert num == 2, "fused path computes exactly two task losses"
    assert pred.shape == tgt.shape

    n_elem = int(pred.size)
    rows = -(-n_elem // _LANES)                    # ceil(n_elem / 128)
    if rows >= tile_rows:
        tr = int(tile_rows)                        # sweep 512-1024 (bigger on v7x)
    else:
        tr = -(-rows // 8) * 8                     # sublane-aligned single tile
    rows_padded = -(-rows // tr) * tr
    pad = rows_padded * _LANES - n_elem

    pred_flat = pred.reshape(-1)
    tgt_flat = tgt.reshape(-1)
    if pad:
        pred_flat = jnp.concatenate(
            [pred_flat, jnp.zeros((pad,), pred_flat.dtype)])
        tgt_flat = jnp.concatenate(
            [tgt_flat, jnp.zeros((pad,), tgt_flat.dtype)])
    # Native dtype on the wire (bf16 stays bf16); cast to f32 inside the kernel.
    pred2d = pred_flat.reshape(rows_padded, _LANES)
    tgt2d = tgt_flat.reshape(rows_padded, _LANES)

    logits2d = logits
    B, C = logits2d.shape
    p = params.reshape(1, num).astype(jnp.float32)

    num_tiles = rows_padded // tr

    kernel = functools.partial(
        _fused_awl_kernel, inv_n_mse=1.0 / n_elem, inv_b_ce=1.0 / B)

    in_bytes = (pred2d.size * pred2d.dtype.itemsize
                + tgt2d.size * tgt2d.dtype.itemsize
                + logits2d.size * logits2d.dtype.itemsize
                + num * 4)
    cost = pl.CostEstimate(
        flops=int(3 * n_elem + 5 * B * C + 10 * num),
        transcendentals=int(B * C + B + 2 * num),
        bytes_accessed=int(in_bytes + 4),
    )

    # TODO(synk): on v7x (2 TensorCores/chip), shard the row axis across cores
    # (leading "parallel" axis + per-core partial sums combined in the wrapper)
    # to use both HBM ports; this version runs the reduction on a single TC.
    out = pl.pallas_call(
        kernel,
        out_shape=jax.ShapeDtypeStruct((1, 1), jnp.float32),
        grid=(num_tiles,),
        in_specs=[
            pl.BlockSpec((1, num), lambda r: (0, 0)),        # params (resident)
            pl.BlockSpec((tr, _LANES), lambda r: (r, 0)),    # pred tile stream
            pl.BlockSpec((tr, _LANES), lambda r: (r, 0)),    # tgt tile stream
            pl.BlockSpec((B, C), lambda r: (0, 0)),          # logits (resident)
        ],
        out_specs=pl.BlockSpec((1, 1), lambda r: (0, 0)),
        scratch_shapes=[pltpu.VMEM((tr, _LANES), jnp.float32)],
        compiler_params=pltpu.CompilerParams(
            dimension_semantics=("arbitrary",)),
        cost_estimate=cost,
    )(p, pred2d, tgt2d, logits2d)
    return out.reshape(())


# ---------------------------------------------------------------------------
# Standalone AWL kernel (module semantics on precomputed scalar losses).
# Two (1, num) inputs (no wrapper-side stack); DMAs issue concurrently anyway.
# ---------------------------------------------------------------------------
def _awl_kernel(params_ref, losses_ref, out_ref):
    p = params_ref[...]                           # (1, num)
    l = losses_ref[...]                           # (1, num)
    p2 = p * p
    terms = 0.5 * pl.reciprocal(p2) * l + jnp.log1p(p2)
    out_ref[...] = jnp.sum(terms, keepdims=True)


def _awl_forward(params, losses):
    num = int(params.shape[0])
    p = params.reshape(1, num).astype(jnp.float32)
    l = losses.reshape(1, num).astype(jnp.float32)
    out = pl.pallas_call(
        _awl_kernel,
        out_shape=jax.ShapeDtypeStruct((1, 1), jnp.float32),
        in_specs=[pl.BlockSpec((1, num), lambda: (0, 0)),
                  pl.BlockSpec((1, num), lambda: (0, 0))],
        out_specs=pl.BlockSpec((1, 1), lambda: (0, 0)),
        cost_estimate=pl.CostEstimate(
            flops=6 * num, transcendentals=2 * num,
            bytes_accessed=8 * num + 4),
    )(p, l)
    return out.reshape(())


@jax.custom_vjp
def automatic_weighted_loss(params, losses):
    """params: (num,) f32 (learnable), losses: (num,) f32 -> scalar f32."""
    return _awl_forward(params, losses)


def _awl_fwd(params, losses):
    return _awl_forward(params, losses), (params, losses)


def _awl_bwd(residuals, g):
    params, losses = residuals
    p = params.astype(jnp.float32)
    l = losses.astype(jnp.float32)
    p2 = p * p
    d_params = g * (-l / (p2 * p) + 2.0 * p / (1.0 + p2))
    d_losses = g * (0.5 / p2)
    return d_params, d_losses


automatic_weighted_loss.defvjp(_awl_fwd, _awl_bwd)


def reference_awl(params, losses):
    p2 = params ** 2
    return jnp.sum(0.5 / p2 * losses + jnp.log(1.0 + p2))


if __name__ == "__main__":
    key = jax.random.PRNGKey(0)
    k1, k2, k3, k4, k5, k6 = jax.random.split(key, 6)

    num = 2
    # Deterministic parameter init, matching torch.ones(num).
    params = jnp.ones((num,), dtype=jnp.float32)

    # --- Small f32 demo (single-tile grid path) ---------------------------
    pred = jax.random.normal(k1, (2, 4, 16, 16), dtype=jnp.float32)
    tgt = jax.random.normal(k2, (2, 4, 16, 16), dtype=jnp.float32)
    logits = jax.random.normal(k3, (2, 8), dtype=jnp.float32)

    loss1_ref = jnp.mean((pred - tgt) ** 2)                  # MSE-style task loss
    loss2_ref = -jnp.mean(jax.nn.log_softmax(logits)[:, 0])  # CE-style task loss
    losses_ref = jnp.stack([loss1_ref, loss2_ref]).astype(jnp.float32)
    ref_total = reference_awl(params, losses_ref)

    fused = fused_automatic_weighted_loss(params, pred, tgt, logits)
    jax.block_until_ready(fused)
    assert jnp.allclose(fused, ref_total, rtol=1e-5, atol=1e-5), (fused, ref_total)

    # --- Larger bf16, non-128-aligned demo (multi-step grid + padding) ----
    pred_b = jax.random.normal(k4, (4, 8, 60, 60), dtype=jnp.float32).astype(jnp.bfloat16)
    tgt_b = jax.random.normal(k5, (4, 8, 60, 60), dtype=jnp.float32).astype(jnp.bfloat16)
    logits_b = jax.random.normal(k6, (16, 8), dtype=jnp.float32)

    p32, t32 = pred_b.astype(jnp.float32), tgt_b.astype(jnp.float32)
    loss1_b = jnp.mean((p32 - t32) ** 2)
    loss2_b = -jnp.mean(jax.nn.log_softmax(logits_b)[:, 0])
    ref_total_b = reference_awl(params, jnp.stack([loss1_b, loss2_b]))

    fused_b = fused_automatic_weighted_loss(params, pred_b, tgt_b, logits_b)
    jax.block_until_ready(fused_b)
    assert jnp.allclose(fused_b, ref_total_b, rtol=1e-4, atol=1e-4), (fused_b, ref_total_b)

    # --- Standalone AWL kernel (module semantics on precomputed losses) ---
    out = automatic_weighted_loss(params, losses_ref)
    jax.block_until_ready(out)
    assert jnp.allclose(out, ref_total, rtol=1e-5, atol=1e-5), (out, ref_total)

    # --- Gradient check: params trainable through the custom_vjp ----------
    gp, gl = jax.grad(automatic_weighted_loss, argnums=(0, 1))(params, losses_ref)
    rgp, rgl = jax.grad(reference_awl, argnums=(0, 1))(params, losses_ref)
    jax.block_until_ready((gp, gl))
    assert jnp.allclose(gp, rgp, rtol=1e-5, atol=1e-5), (gp, rgp)
    assert jnp.allclose(gl, rgl, rtol=1e-5, atol=1e-5), (gl, rgl)

    print("KERNEL_OK")
</pallas_src>

<mosaic_0001>
module attributes {stable_mosaic.version = 11 : i64} {
  func.func @_fused_awl_kernel(%arg0: i32, %arg1: memref<1x2xf32, #tpu.memory_space<vmem>>, %arg2: memref<16x128xf32, #tpu.memory_space<vmem>>, %arg3: memref<16x128xf32, #tpu.memory_space<vmem>>, %arg4: memref<2x8xf32, #tpu.memory_space<vmem>>, %arg5: memref<1x1xf32, #tpu.memory_space<vmem>>, %arg6: memref<16x128xf32, #tpu.memory_space<vmem>>) attributes {dimension_semantics = [#tpu.dimension_semantics<arbitrary>], iteration_bounds = array<i64: 1>, scalar_prefetch = 0 : i64, scratch_operands = 1 : i64, tpu.core_type = #tpu.core_type<tc>, window_params = [{pipeline_mode = #tpu.pipeline_mode<synchronous>, transform_indices = @transform_0, window_bounds = array<i64: 1, 2>}, {transform_indices = @transform_1, window_bounds = array<i64: 16, 128>}, {transform_indices = @transform_2, window_bounds = array<i64: 16, 128>}, {pipeline_mode = #tpu.pipeline_mode<synchronous>, transform_indices = @transform_3, window_bounds = array<i64: 2, 8>}, {pipeline_mode = #tpu.pipeline_mode<synchronous>, transform_indices = @transform_4, window_bounds = array<i64: 1, 1>}]} {
    %c0_i32 = arith.constant 0 : i32
    %0 = arith.cmpi eq, %arg0, %c0_i32 : i32
    %1 = arith.extui %0 : i1 to i32
    %c0_i32_0 = arith.constant 0 : i32
    %2 = arith.cmpi ne, %1, %c0_i32_0 : i32
    scf.if %2 {
      %cst = arith.constant 0.000000e+00 : f32
      %13 = vector.broadcast %cst : f32 to vector<16x128xf32>
      %c0_10 = arith.constant 0 : index
      %c0_11 = arith.constant 0 : index
      %14 = vector.load %arg6[%c0_10, %c0_11] : memref<16x128xf32, #tpu.memory_space<vmem>>, vector<16x128xf32>
      tpu.vector_store %arg6[%c0_10, %c0_11], %13 {strides = array<i32>} : memref<16x128xf32, #tpu.memory_space<vmem>>, vector<16x128xf32>,
    } else {
    }
    %c0 = arith.constant 0 : index
    %c0_1 = arith.constant 0 : index
    %3 = vector.load %arg2[%c0, %c0_1] : memref<16x128xf32, #tpu.memory_space<vmem>>, vector<16x128xf32>
    %c0_2 = arith.constant 0 : index
    %c0_3 = arith.constant 0 : index
    %4 = vector.load %arg3[%c0_2, %c0_3] : memref<16x128xf32, #tpu.memory_space<vmem>>, vector<16x128xf32>
    %5 = arith.subf %3, %4 : vector<16x128xf32>
    %c0_4 = arith.constant 0 : index
    %c0_5 = arith.constant 0 : index
    %6 = vector.load %arg6[%c0_4, %c0_5] : memref<16x128xf32, #tpu.memory_space<vmem>>, vector<16x128xf32>
    %7 = arith.mulf %5, %5 : vector<16x128xf32>
    %8 = arith.addf %6, %7 : vector<16x128xf32>
    %c0_6 = arith.constant 0 : index
    %c0_7 = arith.constant 0 : index
    %9 = vector.load %arg6[%c0_6, %c0_7] : memref<16x128xf32, #tpu.memory_space<vmem>>, vector<16x128xf32>
    tpu.vector_store %arg6[%c0_6, %c0_7], %8 {strides = array<i32>} : memref<16x128xf32, #tpu.memory_space<vmem>>, vector<16x128xf32>,
    %c0_i32_8 = arith.constant 0 : i32
    %10 = arith.cmpi eq, %arg0, %c0_i32_8 : i32
    %11 = arith.extui %10 : i1 to i32
    %c0_i32_9 = arith.constant 0 : i32
    %12 = arith.cmpi ne, %11, %c0_i32_9 : i32
    scf.if %12 {
      %c0_10 = arith.constant 0 : index
      %c0_11 = arith.constant 0 : index
      %13 = vector.load %arg6[%c0_10, %c0_11] : memref<16x128xf32, #tpu.memory_space<vmem>>, vector<16x128xf32>
      %14 = vector.shape_cast %13 : vector<16x128xf32> to vector<1x16x128xf32>
      %cst = arith.constant dense<0.000000e+00> : vector<1xf32>
      %15 = vector.multi_reduction <add>, %14, %cst [1, 2] : vector<1x16x128xf32> to vector<1xf32>
      %16 = vector.shape_cast %15 : vector<1xf32> to vector<1x1x1xf32>
      %17 = vector.extract %16[0, 0, 0] : f32 from vector<1x1x1xf32>
      %18 = vector.broadcast %17 : f32 to vector<1x1xf32>
      %cst_12 = arith.constant 4.8828125E-4 : f32
      %19 = vector.broadcast %cst_12 : f32 to vector<1x1xf32>
      %20 = arith.mulf %18, %19 : vector<1x1xf32>
      %c0_13 = arith.constant 0 : index
      %c0_14 = arith.constant 0 : index
      %21 = vector.load %arg4[%c0_13, %c0_14] : memref<2x8xf32, #tpu.memory_space<vmem>>, vector<2x8xf32>
      %cst_15 = arith.constant dense<0xFF800000> : vector<2xf32>
      %22 = vector.multi_reduction <maximumf>, %21, %cst_15 [1] : vector<2x8xf32> to vector<2xf32>
      %23 = vector.shape_cast %22 : vector<2xf32> to vector<2x1xf32>
      %24 = vector.broadcast %23 : vector<2x1xf32> to vector<2x8xf32>
      %25 = arith.subf %21, %24 : vector<2x8xf32>
      %26 = math.exp %25 : vector<2x8xf32>
      %cst_16 = arith.constant dense<0.000000e+00> : vector<2xf32>
      %27 = vector.multi_reduction <add>, %26, %cst_16 [1] : vector<2x8xf32> to vector<2xf32>
      %28 = vector.shape_cast %27 : vector<2xf32> to vector<2x1xf32>
      %29 = math.log %28 : vector<2x1xf32>
      %30 = arith.addf %23, %29 : vector<2x1xf32>
      %31 = vector.extract_strided_slice %21 {offsets = [0, 0], sizes = [2, 1], strides = [1, 1]} : vector<2x8xf32> to vector<2x1xf32>
      %32 = arith.subf %30, %31 : vector<2x1xf32>
      %33 = vector.shape_cast %32 : vector<2x1xf32> to vector<1x2x1xf32>
      %cst_17 = arith.constant dense<0.000000e+00> : vector<1xf32>
      %34 = vector.multi_reduction <add>, %33, %cst_17 [1, 2] : vector<1x2x1xf32> to vector<1xf32>
      %35 = vector.shape_cast %34 : vector<1xf32> to vector<1x1x1xf32>
      %36 = vector.extract %35[0, 0, 0] : f32 from vector<1x1x1xf32>
      %37 = vector.broadcast %36 : f32 to vector<1x1xf32>
      %cst_18 = arith.constant 5.000000e-01 : f32
      %38 = vector.broadcast %cst_18 : f32 to vector<1x1xf32>
      %39 = arith.mulf %37, %38 : vector<1x1xf32>
      %c0_19 = arith.constant 0 : index
      %c0_20 = arith.constant 0 : index
      %40 = vector.load %arg1[%c0_19, %c0_20] : memref<1x2xf32, #tpu.memory_space<vmem>>, vector<1x2xf32>
      %41 = arith.mulf %40, %40 : vector<1x2xf32>
      %42 = tpu.iota {dimensions = array<i32: 1>} : vector<1x2xi32>
      %c0_i32_21 = arith.constant 0 : i32
      %43 = vector.broadcast %c0_i32_21 : i32 to vector<1x2xi32>
      %44 = arith.cmpi eq, %42, %43 : vector<1x2xi32>
      %45 = vector.shape_cast %20 : vector<1x1xf32> to vector<1x1xf32>
      %46 = vector.broadcast %45 : vector<1x1xf32> to vector<1x2xf32>
      %47 = vector.shape_cast %39 : vector<1x1xf32> to vector<1x1xf32>
      %48 = vector.broadcast %47 : vector<1x1xf32> to vector<1x2xf32>
      %49 = arith.select %44, %46, %48 : vector<1x2xi1>, vector<1x2xf32>
      %50 = tpu.reciprocal %41 : vector<1x2xf32> -> vector<1x2xf32>
      %cst_22 = arith.constant 5.000000e-01 : f32
      %51 = vector.broadcast %cst_22 : f32 to vector<1x2xf32>
      %52 = arith.mulf %51, %50 : vector<1x2xf32>
      %53 = arith.mulf %52, %49 : vector<1x2xf32>
      %54 = math.log1p %41 : vector<1x2xf32>
      %55 = arith.addf %53, %54 : vector<1x2xf32>
      %56 = vector.shape_cast %55 : vector<1x2xf32> to vector<1x1x2xf32>
      %cst_23 = arith.constant dense<0.000000e+00> : vector<1xf32>
      %57 = vector.multi_reduction <add>, %56, %cst_23 [1, 2] : vector<1x1x2xf32> to vector<1xf32>
      %58 = vector.shape_cast %57 : vector<1xf32> to vector<1x1x1xf32>
      %59 = vector.extract %58[0, 0, 0] : f32 from vector<1x1x1xf32>
      %60 = vector.broadcast %59 : f32 to vector<1x1xf32>
      %c0_24 = arith.constant 0 : index
      %c0_25 = arith.constant 0 : index
      %61 = vector.load %arg5[%c0_24, %c0_25] : memref<1x1xf32, #tpu.memory_space<vmem>>, vector<1x1xf32>
      tpu.vector_store %arg5[%c0_24, %c0_25], %60 {strides = array<i32>} : memref<1x1xf32, #tpu.memory_space<vmem>>, vector<1x1xf32>,
    } else {
    }
    return
  }
  func.func @transform_0(%arg0: i32) -> (i32, i32) {
    %c0_i32 = arith.constant 0 : i32
    %c0_i32_0 = arith.constant 0 : i32
    %c0_i32_1 = arith.constant 0 : i32
    return %c0_i32, %c0_i32_0 : i32, i32
  }
  func.func @transform_1(%arg0: i32) -> (i32, i32) {
    %c0_i32 = arith.constant 0 : i32
    %c0_i32_0 = arith.constant 0 : i32
    return %arg0, %c0_i32 : i32, i32
  }
  func.func @transform_2(%arg0: i32) -> (i32, i32) {
    %c0_i32 = arith.constant 0 : i32
    %c0_i32_0 = arith.constant 0 : i32
    return %arg0, %c0_i32 : i32, i32
  }
  func.func @transform_3(%arg0: i32) -> (i32, i32) {
    %c0_i32 = arith.constant 0 : i32
    %c0_i32_0 = arith.constant 0 : i32
    %c0_i32_1 = arith.constant 0 : i32
    return %c0_i32, %c0_i32_0 : i32, i32
  }
  func.func @transform_4(%arg0: i32) -> (i32, i32) {
    %c0_i32 = arith.constant 0 : i32
    %c0_i32_0 = arith.constant 0 : i32
    %c0_i32_1 = arith.constant 0 : i32
    return %c0_i32, %c0_i32_0 : i32, i32
  }
}

</mosaic_0001>

<bundles_post_ra>
// kernel: tpu_custom_call.1
= control target key start
LH: loop header
LB: loop body
LE: loop exit
PB: predicated region body
PF: predicated region fallthrough
CT: control target
= control target key end

     0   :  { %9 = vsyncpa [#allocation4], 0  ;;  %s323_s0 = inlined_call_operand.hbm [shape: f32[1,2], index: 0, kind: input, shape index: {}]   ;;  %s324_s1 = inlined_call_operand.hbm [shape: f32[16,128], index: 1, kind: input, shape index: {}]   ;;  %s325_s2 = inlined_call_operand.hbm [shape: f32[16,128], index: 2, kind: input, shape index: {}]   ;;  %s326_s3 = inlined_call_operand.vmem [shape: f32[2,8], index: 3, kind: input, shape index: {}]   ;;  %s327_s4 = inlined_call_operand.hbm [shape: f32[1,1], index: 4, kind: output, shape index: {}]  }
   0x1   :  { %10 = vsyncpa [#allocation7], 0 }
   0x2   :  { %11 = vsyncpa [#allocation5], 0  ;;  %s277_s15 = smov [#allocation6]  }
   0x3   :  { %s27_s16 = sshll.u32 %s277_s15, 4  ;;  %s28_s16 = int_to_ptr.vmem [resolvable:$true] %s27_s16 }
   0x4   :  { %s199_s17 = scalar_lea.vmem %s28_s16, 256  ;;  %p204_p1 = scmp.lt.s32.totalorder %s28_s16, %s28_s16 }
   0x5   :  { %p200_p0 = scmp.ne.s32.totalorder %s28_s16, %s199_s17  ;;  %p205_p2 = scmp.lt.s32.totalorder %s199_s17, %s199_s17 }
   0x7   :  { %p206_p3 = por %p205_p2, %p204_p1 }
   0x9   :  { %p207_p4 = pnand %p206_p3, %p200_p0 }
   0xb   :  { %210 = shalt.err (!%p207_p4)
}
   0xc   :  { %s278_s18 = smov 128   ;;  %s279_s19 = smov 8  }
   0xd   :  { %33 = dma.hbm_to_vmem [thread:$0]  %s324_s1, 256, %s28_s16, [#allocation7], %s278_s18, %s278_s18, %s279_s19  }
   0xe   :  { %s280_s22 = smov [#allocation3]   ;;  %s281_s24 = smov [#allocation8]  }
   0xf   :  { %s18_s23 = sshll.u32 %s280_s22, 4  ;;  %s39_s25 = sshll.u32 %s281_s24, 4  ;;  %s19_s23 = int_to_ptr.vmem [resolvable:$true] %s18_s23  ;;  %s40_s25 = int_to_ptr.vmem [resolvable:$true] %s39_s25 }
  0x10   :  { %s219_s26 = scalar_lea.vmem %s19_s23, 16  ;;  %s223_s27 = scalar_lea.vmem %s19_s23, 32 }
  0x11   :  { %p220_p5 = scmp.ne.s32.totalorder %s19_s23, %s219_s26  ;;  %p224_p6 = scmp.lt.s32.totalorder %s19_s23, %s19_s23 }
  0x12   :  { %p225_p7 = scmp.lt.s32.totalorder %s223_s27, %s219_s26 }
  0x14   :  { %p226_p8 = por %p225_p7, %p224_p6 }
  0x16   :  { %p227_p9 = pnand %p226_p8, %p220_p5 }
  0x18   :  { %230 = shalt.err (!%p227_p9)
}
  0x19   :  { %21 = dma.hbm_to_vmem [thread:$0]  %s323_s0, 16, %s19_s23, [#allocation4]  }
  0x1a   :  { %s239_s30 = scalar_lea.vmem %s40_s25, 256  ;;  %p244_p11 = scmp.lt.s32.totalorder %s40_s25, %s40_s25 }
  0x1b   :  { %p240_p10 = scmp.ne.s32.totalorder %s40_s25, %s239_s30  ;;  %p245_p12 = scmp.lt.s32.totalorder %s239_s30, %s239_s30 }
  0x1d   :  { %p246_p13 = por %p245_p12, %p244_p11 }
  0x1f   :  { %p247_p0 = pnand %p246_p13, %p240_p10 }
  0x21   :  { %250 = shalt.err (!%p247_p0)
}
  0x22   :  { %45 = dma.hbm_to_vmem [thread:$0]  %s325_s2, 256, %s40_s25, [#allocation7], %s278_s18, %s278_s18, %s279_s19  }
  0x23   :  { %271 = dma.done.wait [#allocation4], 16  }
  0x24   :  { %272 = vsyncadd [#allocation4], 4294967280 }
  0x25   :  { %273 = dma.done.wait [#allocation7], 512  }
  0x26   :  { %274 = vsyncadd [#allocation7], 4294966784  ;;  %vm95_vm0 = vcmask 58368   ;;  %v94_v0 = vld [vmem:[%s326_s3] sm:$0x3]  ;;  %v63_v7 = vld [vmem:[#allocation6] sm:$0xff]  ;;  %v124_v40 = vlaneseq }
  0x27   :  { %v96_v1 = vsel %vm95_vm0, %v94_v0, -inf  ;;  %v64_v8 = vld [vmem:[#allocation6 + $0x8] sm:$0xff]  ;;  %v65_v9 = vld [vmem:[#allocation8] sm:$0xff]  ;;  %v66_v10 = vld [vmem:[#allocation8 + $0x8] sm:$0xff]  ;;  %vm109_vm1 = vcmask 1024   ;;  %vm141_vm4 = vcmask 8192  }
  0x28   :  { %97 = vmax.xlane.f32.xlu0 %v96_v1  ;;  %v67_v11 = vsub.f32 %v63_v7, %v65_v9  ;;  %v68_v12 = vsub.f32 %v64_v8, %v66_v10  ;;  %v122_v36 = vld [vmem:[#allocation3] sm:$0x1]  ;;  %v125_v43 = vand.u32 127, %v124_v40  ;;  %s282_s3 = smov [#allocation9]   ;;  %vm153_vm5 = vcmask 0  }
  0x29   :  { %v123_v37 = vmul.f32 %v122_v36, %v122_v36  ;;  %s161_s8 = sshll.u32 %s282_s3, 4  ;;  %s162_s8 = int_to_ptr.vmem [resolvable:$true] %s161_s8 }
  0x2a   :  { %v71_v13 = vmul.f32 %v67_v11, %v67_v11  ;;  %v72_v14 = vmul.f32 %v68_v12, %v68_v12  ;;  %vm126_vm2 = vcmp.eq.s32.totalorder %v125_v43, 0  ;;  %s251_s10 = scalar_lea.vmem %s162_s8, 16  ;;  %s255_s11 = scalar_lea.vmem %s162_s8, 32 }
  0x2b   :  { %v131_v38 = vadd.f32 1.0, %v123_v37  ;;  %v134_v39 = vmul.f32 -0.5, %v123_v37  ;;  %v137_v44 = vand.u32 2147483647, %v123_v37  ;;  %p252_p1 = scmp.ne.s32.totalorder %s162_s8, %s251_s10  ;;  %p256_p2 = scmp.lt.s32.totalorder %s162_s8, %s162_s8 }
  0x2c   :  { %v82_v15 = vadd.f32 %v72_v14, %v71_v13  ;;  %p257_p3 = scmp.lt.s32.totalorder %s255_s11, %s251_s10 }
  0x2d   :  { %v135_v41 = vadd.f32 1.0, %v134_v39  ;;  %vm138_vm3 = vcmp.lt.f32.partialorder %v137_v44, 0.0004427343 }
  0x2e   :  { %83 = vadd.xlane.f32.xlu1 %v82_v15  ;;  %p258_p4 = por %p257_p3, %p256_p2 }
  0x2f   :  { %v136_v48 = vmul.f32 %v135_v41, %v123_v37 }
  0x30   :  { %p259_p5 = pnand %p258_p4, %p252_p1 }
  0xb1   :  { %v98_v2 = vpop.xlane.xlu0 %97 }
  0xb2   :  { %v99_v3 = vsub.f32 %v94_v0, %v98_v2 }
  0xb4   :  { %v100_v4 = vmul.f32 1.442695, %v99_v3 }
  0xb6   :  { %183 = vpow2.f32 %v100_v4 }
  0xb7   :  { %v84_v22 = vpop.xlane.xlu1 %83 }
  0xb8   :  { %v85_v23 = vrot.slane %v84_v22, 4 }
  0xba   :  { %v86_v24 = vadd.f32 %v85_v23, %v84_v22 }
  0xbc   :  { %v87_v25 = vrot.slane %v86_v24, 2 }
  0xbe   :  { %v88_v26 = vadd.f32 %v87_v25, %v86_v24 }
  0xc0   :  { %v89_v27 = vrot.slane %v88_v26, 1 }
  0xc2   :  { %v90_v28 = vadd.f32 %v89_v27, %v88_v26 }
  0xc3   :  { %v184_v5 = vpop.eup %183 }
  0xc4   :  { %v102_v6 = vsel %vm95_vm0, %v184_v5, 0.0  ;;  %171 = vpush %v90_v28 }
  0xc5   :  { %103 = vadd.xlane.f32.xlu0 %v102_v6 }
  0xf5   :  { %s172_s0 = spop %171 }
  0xf6   :  { %v92_v46 = vstv %s172_s0 }
  0xf7   :  { %v93_v51 = vmul.f32 0.00048828125, %v92_v46 }
 0x14e   :  { %v104_v16 = vpop.xlane.xlu0 %103 }
 0x14f   :  { %185 = vlog2.f32 %v104_v16 }
 0x150   :  { %187 = vlog2.f32 %v131_v38 }
 0x151   :  { %189 = vrcp.f32 %v123_v37 }
 0x15c   :  { %v186_v17 = vpop.eup %185 }
 0x15d   :  { %v106_v18 = vmul.f32 0.6931472, %v186_v17  ;;  %v188_v42 = vpop.eup %187 }
 0x15e   :  { %v190_v45 = vpop.eup %189  ;;  %v133_v47 = vmul.f32 0.6931472, %v188_v42 }
 0x15f   :  { %v107_v19 = vadd.f32 %v106_v18, %v98_v2  ;;  %v129_v50 = vmul.f32 0.5, %v190_v45 }
 0x160   :  { %v139_v54 = vsel %vm138_vm3, %v136_v48, %v133_v47 }
 0x161   :  { %v108_v20 = vsub.f32 %v107_v19, %v94_v0 }
 0x163   :  { %v110_v21 = vsel %vm109_vm1, %v108_v20, 0.0 }
 0x164   :  { %111 = vadd.xlane.f32.xlu1 %v110_v21 }
 0x1ed   :  { %v112_v29 = vpop.xlane.xlu1 %111 }
 0x1ee   :  { %v113_v30 = vrot.slane %v112_v29, 4 }
 0x1f0   :  { %v114_v31 = vadd.f32 %v113_v30, %v112_v29 }
 0x1f2   :  { %v115_v32 = vrot.slane %v114_v31, 2 }
 0x1f4   :  { %v116_v33 = vadd.f32 %v115_v32, %v114_v31 }
 0x1f6   :  { %v117_v34 = vrot.slane %v116_v33, 1 }
 0x1f8   :  { %v118_v35 = vadd.f32 %v117_v34, %v116_v33 }
 0x1fa   :  { %173 = vpush %v118_v35 }
 0x22b   :  { %s174_s2 = spop %173 }
 0x22c   :  { %v120_v49 = vstv %s174_s2 }
 0x22d   :  { %v121_v52 = vmul.f32 0.5, %v120_v49 }
 0x22f   :  { %v127_v53 = vsel %vm126_vm2, %v93_v51, %v121_v52 }
 0x230   :  { %v130_v55 = vmul.f32 %v129_v50, %v127_v53 }
 0x232   :  { %v140_v56 = vadd.f32 %v139_v54, %v130_v55 }
 0x234   :  { %v142_v57 = vsel %vm141_vm4, %v140_v56, 0.0 }
 0x235   :  { %143 = vadd.xlane.f32.xlu0 %v142_v57 }
 0x2be   :  { %v144_v58 = vpop.xlane.xlu0 %143 }
 0x2bf   :  { %v145_v59 = vrot.slane %v144_v58, 4 }
 0x2c1   :  { %v146_v60 = vadd.f32 %v145_v59, %v144_v58 }
 0x2c3   :  { %v147_v61 = vrot.slane %v146_v60, 2 }
 0x2c5   :  { %v148_v62 = vadd.f32 %v147_v61, %v146_v60 }
 0x2c7   :  { %v149_v63 = vrot.slane %v148_v62, 1 }
 0x2c9   :  { %v150_v0 = vadd.f32 %v149_v63, %v148_v62 }
 0x2cb   :  { %175 = vpush %v150_v0 }
 0x2fc   :  { %s176_s9 = spop %175 }
 0x2fd   :  { %v152_v1 = vstv %s176_s9 }
 0x2fe   :  { %154 = vst.msk [vmem:[#allocation9] sm:$0x1] %vm153_vm5, %v152_v1 }
 0x2ff   :  { %262 = shalt.err (!%p259_p5)
}
 0x300   :  { %164 = dma.vmem_to_hbm [thread:$0]  %s162_s8, 16, %s327_s4, [#allocation5]  }
 0x301   :  { %275 = dma.done.wait [#allocation5], 16  }
 0x302   :  { %276 = vsyncadd [#allocation5], 4294967280 }
 0x303   :  { %168 = vsyncpa [#allocation4], 1 }
 0x304   :  { %169 = vsyncpa [#allocation7], 1 }
 0x305   :  { %170 = vsyncpa [#allocation5], 1 }

</bundles_post_ra>
